<compile_context>
chip_gen: v7x
topology: tpu7x:2x2x1
jax: 0.10.0
libtpu: 0.0.40
codegen_flags: <defaults>
</compile_context>

<pallas_src>
import math
import functools

import jax
import jax.numpy as jnp
from jax.experimental import pallas as pl
from jax.experimental.pallas import tpu as pltpu

LN_EPS = 1e-5  # PyTorch nn.LayerNorm default

# Row layout of the packed per-sublayer vector bundle "vecs" (L, 11, D), f32.
_PRE_G, _PRE_B, _BQ, _BK, _BV, _BO, _LN1_G, _LN1_B, _B2, _LN2_G, _LN2_B = range(11)


def _layernorm(x, g, b):
    """Single-pass LayerNorm: var = E[x^2] - mu^2 (halves VPU/XLU passes)."""
    mu = jnp.mean(x, axis=-1, keepdims=True)
    ex2 = jnp.mean(x * x, axis=-1, keepdims=True)
    var = ex2 - mu * mu
    return (x - mu) * jax.lax.rsqrt(var + LN_EPS) * g + b


def encoder_kernel(x_ref,
                   wqkv_ref, wo_ref, w1_ref, w2_ref, vec_ref, b1_ref,
                   o_ref, acc_ref, *, heads):
    """One grid step = one (outer LayerNorm + post-norm TransformerEncoderLayer)
    sublayer applied to one batch block.  Activations are kept resident in the
    f32 VMEM scratch `acc_ref` across the inner ('arbitrary') sublayer axis."""
    l = pl.program_id(1)
    bt, S, D = x_ref.shape
    M = bt * S
    H = heads
    hd = D // H

    # First sublayer of this batch block: load activations into the resident scratch.
    @pl.when(l == 0)
    def _():
        acc_ref[...] = x_ref[...].reshape(M, D).astype(jnp.float32)

    vec = vec_ref[0]                       # (11, D) f32 bundle of small vectors

    def row(i):                            # (1, D) f32 row, broadcast over M
        return vec[i:i + 1]

    b1 = b1_ref[0]                         # (1, mlp) f32

    # ---- outer LayerNorm (spatial_norm / temporal_norm) ----
    x = _layernorm(acc_ref[...], row(_PRE_G), row(_PRE_B))            # (M, D) f32

    # ---- self-attention (nn.MultiheadAttention, packed in_proj) ----
    # wqkv_ref is (D, 3D) bf16, pre-transposed; 1/sqrt(hd) already folded into
    # the Q columns and the Q bias at pack time.
    xb = x.astype(jnp.bfloat16)
    qkv = jnp.dot(xb, wqkv_ref[0], preferred_element_type=jnp.float32)  # (M, 3D) f32
    q = (qkv[:, 0 * D:1 * D] + row(_BQ)).reshape(bt, S, D).astype(jnp.bfloat16)
    k = (qkv[:, 1 * D:2 * D] + row(_BK)).reshape(bt, S, D).astype(jnp.bfloat16)
    v = (qkv[:, 2 * D:3 * D] + row(_BV)).reshape(bt, S, D).astype(jnp.bfloat16)

    # Static head loop (MXU work identical to a batched-over-heads einsum);
    # softmax stays in f32 on the VPU/EUP.  NOTE: for real workloads hd should
    # be 128 and S >= 128 to fill the MXU (test shapes here are tiny).
    ctx_heads = []
    for h in range(H):
        sl = slice(h * hd, (h + 1) * hd)
        s = jnp.einsum('bqd,bkd->bqk', q[..., sl], k[..., sl],
                       preferred_element_type=jnp.float32)            # (bt, S, S) f32
        s = s - jnp.max(s, axis=-1, keepdims=True)
        p = jnp.exp(s)
        p = p * pl.reciprocal(jnp.sum(p, axis=-1, keepdims=True), approx=True)
        ctx = jnp.einsum('bqk,bkd->bqd', p.astype(jnp.bfloat16), v[..., sl],
                         preferred_element_type=jnp.float32)          # (bt, S, hd) f32
        ctx_heads.append(ctx.reshape(M, hd))

    # Heads concatenated along lanes -> single full-K out-projection matmul.
    ctx_all = jnp.concatenate(ctx_heads, axis=-1).astype(jnp.bfloat16)  # (M, D) bf16
    attn = jnp.dot(ctx_all, wo_ref[0],
                   preferred_element_type=jnp.float32) + row(_BO)       # (M, D) f32

    # ---- residual + norm1 (post-norm; dropout == identity in eval) ----
    h1 = _layernorm(x + attn, row(_LN1_G), row(_LN1_B))

    # ---- feed-forward (ReLU, PyTorch default), bf16 MXU / f32 accumulate ----
    f = jnp.dot(h1.astype(jnp.bfloat16), w1_ref[0],
                preferred_element_type=jnp.float32) + b1               # (M, mlp) f32
    f = jnp.maximum(f, 0.0)
    f = jnp.dot(f.astype(jnp.bfloat16), w2_ref[0],
                preferred_element_type=jnp.float32) + row(_B2)         # (M, D) f32

    out = _layernorm(h1 + f, row(_LN2_G), row(_LN2_B))

    acc_ref[...] = out
    # Write HBM only once, after the last sublayer.
    @pl.when(l == pl.num_programs(1) - 1)
    def _():
        o_ref[...] = out.reshape(bt, S, D).astype(o_ref.dtype)


_PARAM_ORDER = ["wqkv_t", "wo_t", "w1_t", "w2_t", "vecs", "b1"]


def spatial_temporal_encoder(x, packed, heads, *, batch_tile=None,
                             vmem_limit_bytes=None):
    """Whole encoder (all 2*depth sublayers) in a single pallas_call."""
    B, S, D = x.shape
    L = packed["wqkv_t"].shape[0]          # number of sublayers = 2 * depth
    mlp = packed["w1_t"].shape[-1]
    if batch_tile is None:
        # nb >= 2 by default so v7x's second TensorCore is used; neutral on
        # 1-TC chips.  (Bigger batch_tile minimizes weight re-stream traffic
        # nb*L*weight_bytes; pass batch_tile explicitly to trade this off.)
        batch_tile = B // 2 if (B >= 2 and B % 2 == 0) else B
    bt = batch_tile
    assert B % bt == 0 and D % heads == 0
    nb = B // bt

    args = [packed[k] for k in _PARAM_ORDER]

    def param_spec(a):
        nd = a.ndim
        # Stream one sublayer's params per grid step along the inner layer axis.
        # (If profiling shows exposed DMA per sublayer, the large weight specs
        # can take pipeline_mode=pl.Buffered(3) at extra VMEM cost.)
        return pl.BlockSpec((1,) + a.shape[1:],
                            lambda b, l, _nd=nd: (l,) + (0,) * (_nd - 1))

    in_specs = [pl.BlockSpec((bt, S, D), lambda b, l: (b, 0, 0))]
    in_specs += [param_spec(a) for a in args]

    if vmem_limit_bytes is None:
        # Explicit VMEM budget: double-buffered bf16 weights + f32 vector
        # bundles + double-buffered x/out blocks + resident f32 scratch +
        # headroom for the f32 intermediates; clamped to v7x's 64 MiB physical
        # VMEM (v5e/v6e have 128 MiB — pass vmem_limit_bytes to use more).
        M = bt * S
        w_bytes = 2 * 2 * (D * 3 * D + D * D + 2 * D * mlp)            # bf16, x2 buf
        v_bytes = 2 * 4 * (11 * D + mlp)
        io_bytes = 2 * 2 * (bt * S * D) * x.dtype.itemsize
        scratch_bytes = 4 * M * D
        interm_bytes = 4 * M * (3 * D + mlp + 4 * D)
        est = w_bytes + v_bytes + io_bytes + scratch_bytes + interm_bytes
        vmem_limit_bytes = min(max(int(est * 1.5), 32 * 1024 * 1024),
                               64 * 1024 * 1024)

    return pl.pallas_call(
        functools.partial(encoder_kernel, heads=heads),
        out_shape=jax.ShapeDtypeStruct((B, S, D), x.dtype),
        grid=(nb, L),
        in_specs=in_specs,
        out_specs=pl.BlockSpec((bt, S, D), lambda b, l: (b, 0, 0)),
        scratch_shapes=[pltpu.VMEM((bt * S, D), jnp.float32)],
        compiler_params=pltpu.CompilerParams(
            dimension_semantics=("parallel", "arbitrary"),
            vmem_limit_bytes=vmem_limit_bytes),
    )(x, *args)


def init_sublayer_params(key, dim, mlp_dim):
    """PyTorch-layout params for one outer LayerNorm + one TransformerEncoderLayer."""
    ks = jax.random.split(key, 10)
    n = lambda k, shape, s: (s * jax.random.normal(k, shape, jnp.float32))
    return {
        "pre_g": 1.0 + n(ks[0], (1, dim), 0.05),
        "pre_b": n(ks[1], (1, dim), 0.05),
        "wqkv":  n(ks[2], (3 * dim, dim), 1.0 / math.sqrt(dim)),   # packed in_proj
        "bqkv":  n(ks[3], (1, 3 * dim), 0.02),
        "wo":    n(ks[4], (dim, dim), 1.0 / math.sqrt(dim)),
        "bo":    n(ks[5], (1, dim), 0.02),
        "ln1_g": jnp.ones((1, dim), jnp.float32),
        "ln1_b": jnp.zeros((1, dim), jnp.float32),
        "w1":    n(ks[6], (mlp_dim, dim), 1.0 / math.sqrt(dim)),
        "b1":    n(ks[7], (1, mlp_dim), 0.02),
        "w2":    n(ks[8], (dim, mlp_dim), 1.0 / math.sqrt(mlp_dim)),
        "b2":    n(ks[9], (1, dim), 0.02),
        "ln2_g": jnp.ones((1, dim), jnp.float32),
        "ln2_b": jnp.zeros((1, dim), jnp.float32),
    }


def pack_params(sublayers, heads):
    """Stack all sublayers along a leading layer axis.

    Weights are pre-transposed (kernel computes x @ W directly) and pre-cast to
    bf16; the 1/sqrt(head_dim) attention scale is folded into the Q weight
    columns and Q bias; the small per-sublayer vectors are bundled into a
    single (L, 11, D) f32 array to cut per-step DMA descriptor count."""
    dim = sublayers[0]["wo"].shape[0]
    hd = dim // heads
    scale = 1.0 / math.sqrt(hd)
    stack = lambda fn: jnp.stack([fn(p) for p in sublayers], axis=0)

    def wqkv_t(p):
        w = p["wqkv"].T                                  # (D, 3D): [Wq^T | Wk^T | Wv^T]
        w = jnp.concatenate([w[:, :dim] * scale, w[:, dim:]], axis=1)
        return w.astype(jnp.bfloat16)

    def vecs(p):
        bqkv = p["bqkv"].reshape(3, dim)                 # rows: bq, bk, bv
        return jnp.concatenate([
            p["pre_g"], p["pre_b"],                      # 0, 1
            bqkv[0:1] * scale, bqkv[1:2], bqkv[2:3],     # 2, 3, 4
            p["bo"],                                     # 5
            p["ln1_g"], p["ln1_b"],                      # 6, 7
            p["b2"],                                     # 8
            p["ln2_g"], p["ln2_b"],                      # 9, 10
        ], axis=0).astype(jnp.float32)                   # (11, D)

    return {
        "wqkv_t": stack(wqkv_t),                                        # (L, D, 3D) bf16
        "wo_t":   stack(lambda p: p["wo"].T.astype(jnp.bfloat16)),      # (L, D, D)  bf16
        "w1_t":   stack(lambda p: p["w1"].T.astype(jnp.bfloat16)),      # (L, D, mlp) bf16
        "w2_t":   stack(lambda p: p["w2"].T.astype(jnp.bfloat16)),      # (L, mlp, D) bf16
        "vecs":   stack(vecs),                                          # (L, 11, D) f32
        "b1":     stack(lambda p: p["b1"]),                             # (L, 1, mlp) f32
    }


if __name__ == "__main__":
    # Small shapes consistent with the module's (B, S, dim) batch-first input.
    B, S = 2, 8
    DIM, DEPTH, HEADS, MLP_DIM = 32, 2, 4, 64

    key = jax.random.PRNGKey(0)
    k_x, key = jax.random.split(key)
    x = jax.random.normal(k_x, (B, S, DIM), jnp.float32)

    sublayers = []
    for _ in range(DEPTH):
        k_sp, k_tp, key = jax.random.split(key, 3)
        sublayers.append(init_sublayer_params(k_sp, DIM, MLP_DIM))  # spatial_norm + spatial_trans
        sublayers.append(init_sublayer_params(k_tp, DIM, MLP_DIM))  # temporal_norm + temporal_trans
    packed = pack_params(sublayers, HEADS)

    out = spatial_temporal_encoder(x, packed, HEADS)
    out = jax.block_until_ready(out)
    assert out.shape == (B, S, DIM)
    assert bool(jnp.all(jnp.isfinite(out)))
    print("KERNEL_OK")
</pallas_src>

<mosaic_0001>
module attributes {stable_mosaic.version = 11 : i64} {
  func.func @encoder_kernel(%arg0: i32, %arg1: i32, %arg2: memref<1x8x32xf32, #tpu.memory_space<vmem>>, %arg3: memref<1x32x96xbf16, #tpu.memory_space<vmem>>, %arg4: memref<1x32x32xbf16, #tpu.memory_space<vmem>>, %arg5: memref<1x32x64xbf16, #tpu.memory_space<vmem>>, %arg6: memref<1x64x32xbf16, #tpu.memory_space<vmem>>, %arg7: memref<1x11x32xf32, #tpu.memory_space<vmem>>, %arg8: memref<1x1x64xf32, #tpu.memory_space<vmem>>, %arg9: memref<1x8x32xf32, #tpu.memory_space<vmem>>, %arg10: memref<8x32xf32, #tpu.memory_space<vmem>>) attributes {dimension_semantics = [#tpu.dimension_semantics<parallel>, #tpu.dimension_semantics<arbitrary>], iteration_bounds = array<i64: 2, 4>, scalar_prefetch = 0 : i64, scratch_operands = 1 : i64, tpu.core_type = #tpu.core_type<tc>, window_params = [{transform_indices = @transform_0, window_bounds = array<i64: 1, 8, 32>}, {transform_indices = @transform_1, window_bounds = array<i64: 1, 32, 96>}, {transform_indices = @transform_2, window_bounds = array<i64: 1, 32, 32>}, {transform_indices = @transform_3, window_bounds = array<i64: 1, 32, 64>}, {transform_indices = @transform_4, window_bounds = array<i64: 1, 64, 32>}, {transform_indices = @transform_5, window_bounds = array<i64: 1, 11, 32>}, {transform_indices = @transform_6, window_bounds = array<i64: 1, 1, 64>}, {transform_indices = @transform_7, window_bounds = array<i64: 1, 8, 32>}]} {
    %c0_i32 = arith.constant 0 : i32
    %0 = arith.cmpi eq, %arg1, %c0_i32 : i32
    %1 = arith.extui %0 : i1 to i32
    %c0_i32_0 = arith.constant 0 : i32
    %2 = arith.cmpi ne, %1, %c0_i32_0 : i32
    scf.if %2 {
      %c0_58 = arith.constant 0 : index
      %c0_59 = arith.constant 0 : index
      %c0_60 = arith.constant 0 : index
      %199 = vector.load %arg2[%c0_58, %c0_59, %c0_60] : memref<1x8x32xf32, #tpu.memory_space<vmem>>, vector<1x8x32xf32>
      %200 = vector.shape_cast %199 : vector<1x8x32xf32> to vector<8x32xf32>
      %c0_61 = arith.constant 0 : index
      %c0_62 = arith.constant 0 : index
      %201 = vector.load %arg10[%c0_61, %c0_62] : memref<8x32xf32, #tpu.memory_space<vmem>>, vector<8x32xf32>
      tpu.vector_store %arg10[%c0_61, %c0_62], %200 {strides = array<i32>} : memref<8x32xf32, #tpu.memory_space<vmem>>, vector<8x32xf32>,
    } else {
    }
    %c0 = arith.constant 0 : index
    %c0_1 = arith.constant 0 : index
    %c0_2 = arith.constant 0 : index
    %3 = vector.load %arg7[%c0, %c0_1, %c0_2] : memref<1x11x32xf32, #tpu.memory_space<vmem>>, vector<1x11x32xf32>
    %4 = vector.shape_cast %3 : vector<1x11x32xf32> to vector<11x32xf32>
    %c0_3 = arith.constant 0 : index
    %c0_4 = arith.constant 0 : index
    %c0_5 = arith.constant 0 : index
    %5 = vector.load %arg8[%c0_3, %c0_4, %c0_5] : memref<1x1x64xf32, #tpu.memory_space<vmem>>, vector<1x1x64xf32>
    %6 = vector.shape_cast %5 : vector<1x1x64xf32> to vector<1x64xf32>
    %c0_6 = arith.constant 0 : index
    %c0_7 = arith.constant 0 : index
    %7 = vector.load %arg10[%c0_6, %c0_7] : memref<8x32xf32, #tpu.memory_space<vmem>>, vector<8x32xf32>
    %8 = vector.extract_strided_slice %4 {offsets = [0, 0], sizes = [1, 32], strides = [1, 1]} : vector<11x32xf32> to vector<1x32xf32>
    %9 = vector.extract_strided_slice %4 {offsets = [1, 0], sizes = [1, 32], strides = [1, 1]} : vector<11x32xf32> to vector<1x32xf32>
    %cst = arith.constant dense<0.000000e+00> : vector<8xf32>
    %10 = vector.multi_reduction <add>, %7, %cst [1] : vector<8x32xf32> to vector<8xf32>
    %11 = vector.shape_cast %10 : vector<8xf32> to vector<8x1xf32>
    %cst_8 = arith.constant 3.200000e+01 : f32
    %12 = vector.broadcast %cst_8 : f32 to vector<8x1xf32>
    %13 = arith.divf %11, %12 : vector<8x1xf32>
    %14 = arith.mulf %7, %7 : vector<8x32xf32>
    %cst_9 = arith.constant dense<0.000000e+00> : vector<8xf32>
    %15 = vector.multi_reduction <add>, %14, %cst_9 [1] : vector<8x32xf32> to vector<8xf32>
    %16 = vector.shape_cast %15 : vector<8xf32> to vector<8x1xf32>
    %cst_10 = arith.constant 3.200000e+01 : f32
    %17 = vector.broadcast %cst_10 : f32 to vector<8x1xf32>
    %18 = arith.divf %16, %17 : vector<8x1xf32>
    %19 = arith.mulf %13, %13 : vector<8x1xf32>
    %20 = arith.subf %18, %19 : vector<8x1xf32>
    %21 = vector.broadcast %13 : vector<8x1xf32> to vector<8x32xf32>
    %22 = arith.subf %7, %21 : vector<8x32xf32>
    %cst_11 = arith.constant 9.99999974E-6 : f32
    %23 = vector.broadcast %cst_11 : f32 to vector<8x1xf32>
    %24 = arith.addf %20, %23 : vector<8x1xf32>
    %25 = math.rsqrt %24 : vector<8x1xf32>
    %26 = vector.broadcast %25 : vector<8x1xf32> to vector<8x32xf32>
    %27 = arith.mulf %22, %26 : vector<8x32xf32>
    %28 = vector.broadcast %8 : vector<1x32xf32> to vector<8x32xf32>
    %29 = arith.mulf %27, %28 : vector<8x32xf32>
    %30 = vector.broadcast %9 : vector<1x32xf32> to vector<8x32xf32>
    %31 = arith.addf %29, %30 : vector<8x32xf32>
    %32 = arith.truncf %31 : vector<8x32xf32> to vector<8x32xbf16>
    %c0_12 = arith.constant 0 : index
    %c0_13 = arith.constant 0 : index
    %c0_14 = arith.constant 0 : index
    %33 = vector.load %arg3[%c0_12, %c0_13, %c0_14] : memref<1x32x96xbf16, #tpu.memory_space<vmem>>, vector<1x32x96xbf16>
    %34 = vector.shape_cast %33 : vector<1x32x96xbf16> to vector<32x96xbf16>
    %cst_15 = arith.constant dense<0.000000e+00> : vector<8x96xf32>
    %35 = tpu.matmul %32, %34, %cst_15 {dimension_numbers = #tpu.dot_dimension_numbers<[1], [0], [0], [1], [0, 0, 1, 1], [], []>} : vector<8x32xbf16>, vector<32x96xbf16>, vector<8x96xf32> -> vector<8x96xf32>
    %36 = vector.extract_strided_slice %35 {offsets = [0, 0], sizes = [8, 32], strides = [1, 1]} : vector<8x96xf32> to vector<8x32xf32>
    %37 = vector.extract_strided_slice %4 {offsets = [2, 0], sizes = [1, 32], strides = [1, 1]} : vector<11x32xf32> to vector<1x32xf32>
    %38 = vector.broadcast %37 : vector<1x32xf32> to vector<8x32xf32>
    %39 = arith.addf %36, %38 : vector<8x32xf32>
    %40 = vector.shape_cast %39 : vector<8x32xf32> to vector<1x8x32xf32>
    %41 = arith.truncf %40 : vector<1x8x32xf32> to vector<1x8x32xbf16>
    %42 = vector.extract_strided_slice %35 {offsets = [0, 32], sizes = [8, 32], strides = [1, 1]} : vector<8x96xf32> to vector<8x32xf32>
    %43 = vector.extract_strided_slice %4 {offsets = [3, 0], sizes = [1, 32], strides = [1, 1]} : vector<11x32xf32> to vector<1x32xf32>
    %44 = vector.broadcast %43 : vector<1x32xf32> to vector<8x32xf32>
    %45 = arith.addf %42, %44 : vector<8x32xf32>
    %46 = vector.shape_cast %45 : vector<8x32xf32> to vector<1x8x32xf32>
    %47 = arith.truncf %46 : vector<1x8x32xf32> to vector<1x8x32xbf16>
    %48 = vector.extract_strided_slice %35 {offsets = [0, 64], sizes = [8, 32], strides = [1, 1]} : vector<8x96xf32> to vector<8x32xf32>
    %49 = vector.extract_strided_slice %4 {offsets = [4, 0], sizes = [1, 32], strides = [1, 1]} : vector<11x32xf32> to vector<1x32xf32>
    %50 = vector.broadcast %49 : vector<1x32xf32> to vector<8x32xf32>
    %51 = arith.addf %48, %50 : vector<8x32xf32>
    %52 = vector.shape_cast %51 : vector<8x32xf32> to vector<1x8x32xf32>
    %53 = arith.truncf %52 : vector<1x8x32xf32> to vector<1x8x32xbf16>
    %54 = vector.extract_strided_slice %41 {offsets = [0, 0, 0], sizes = [1, 8, 8], strides = [1, 1, 1]} : vector<1x8x32xbf16> to vector<1x8x8xbf16>
    %55 = vector.extract_strided_slice %47 {offsets = [0, 0, 0], sizes = [1, 8, 8], strides = [1, 1, 1]} : vector<1x8x32xbf16> to vector<1x8x8xbf16>
    "tpu.trace_start"() <{level = 10 : i32, message = "bqd,bkd->bqk"}> : () -> ()
    %cst_16 = arith.constant dense<0.000000e+00> : vector<1x8x8xf32>
    %56 = tpu.matmul %54, %55, %cst_16 {dimension_numbers = #tpu.dot_dimension_numbers<[2], [2], [1], [1], [0, 0, 0, 1, 1, 1], [0], [0]>} : vector<1x8x8xbf16>, vector<1x8x8xbf16>, vector<1x8x8xf32> -> vector<1x8x8xf32>
    "tpu.trace_stop"() : () -> ()
    %cst_17 = arith.constant dense<0xFF800000> : vector<1x8xf32>
    %57 = vector.multi_reduction <maximumf>, %56, %cst_17 [2] : vector<1x8x8xf32> to vector<1x8xf32>
    %58 = vector.shape_cast %57 : vector<1x8xf32> to vector<1x8x1xf32>
    %59 = vector.broadcast %58 : vector<1x8x1xf32> to vector<1x8x8xf32>
    %60 = arith.subf %56, %59 : vector<1x8x8xf32>
    %61 = math.exp %60 : vector<1x8x8xf32>
    %cst_18 = arith.constant dense<0.000000e+00> : vector<1x8xf32>
    %62 = vector.multi_reduction <add>, %61, %cst_18 [2] : vector<1x8x8xf32> to vector<1x8xf32>
    %63 = vector.shape_cast %62 : vector<1x8xf32> to vector<1x8x1xf32>
    %64 = tpu.reciprocal %63 {approx = true} : vector<1x8x1xf32> -> vector<1x8x1xf32>
    %65 = vector.broadcast %64 : vector<1x8x1xf32> to vector<1x8x8xf32>
    %66 = arith.mulf %61, %65 : vector<1x8x8xf32>
    %67 = arith.truncf %66 : vector<1x8x8xf32> to vector<1x8x8xbf16>
    %68 = vector.extract_strided_slice %53 {offsets = [0, 0, 0], sizes = [1, 8, 8], strides = [1, 1, 1]} : vector<1x8x32xbf16> to vector<1x8x8xbf16>
    "tpu.trace_start"() <{level = 10 : i32, message = "bqk,bkd->bqd"}> : () -> ()
    %cst_19 = arith.constant dense<0.000000e+00> : vector<1x8x8xf32>
    %69 = tpu.matmul %67, %68, %cst_19 {dimension_numbers = #tpu.dot_dimension_numbers<[2], [1], [1], [2], [0, 0, 0, 1, 1, 2], [0], [0]>} : vector<1x8x8xbf16>, vector<1x8x8xbf16>, vector<1x8x8xf32> -> vector<1x8x8xf32>
    "tpu.trace_stop"() : () -> ()
    %70 = vector.shape_cast %69 : vector<1x8x8xf32> to vector<8x8xf32>
    %71 = vector.extract_strided_slice %41 {offsets = [0, 0, 8], sizes = [1, 8, 8], strides = [1, 1, 1]} : vector<1x8x32xbf16> to vector<1x8x8xbf16>
    %72 = vector.extract_strided_slice %47 {offsets = [0, 0, 8], sizes = [1, 8, 8], strides = [1, 1, 1]} : vector<1x8x32xbf16> to vector<1x8x8xbf16>
    "tpu.trace_start"() <{level = 10 : i32, message = "bqd,bkd->bqk"}> : () -> ()
    %cst_20 = arith.constant dense<0.000000e+00> : vector<1x8x8xf32>
    %73 = tpu.matmul %71, %72, %cst_20 {dimension_numbers = #tpu.dot_dimension_numbers<[2], [2], [1], [1], [0, 0, 0, 1, 1, 1], [0], [0]>} : vector<1x8x8xbf16>, vector<1x8x8xbf16>, vector<1x8x8xf32> -> vector<1x8x8xf32>
    "tpu.trace_stop"() : () -> ()
    %cst_21 = arith.constant dense<0xFF800000> : vector<1x8xf32>
    %74 = vector.multi_reduction <maximumf>, %73, %cst_21 [2] : vector<1x8x8xf32> to vector<1x8xf32>
    %75 = vector.shape_cast %74 : vector<1x8xf32> to vector<1x8x1xf32>
    %76 = vector.broadcast %75 : vector<1x8x1xf32> to vector<1x8x8xf32>
    %77 = arith.subf %73, %76 : vector<1x8x8xf32>
    %78 = math.exp %77 : vector<1x8x8xf32>
    %cst_22 = arith.constant dense<0.000000e+00> : vector<1x8xf32>
    %79 = vector.multi_reduction <add>, %78, %cst_22 [2] : vector<1x8x8xf32> to vector<1x8xf32>
    %80 = vector.shape_cast %79 : vector<1x8xf32> to vector<1x8x1xf32>
    %81 = tpu.reciprocal %80 {approx = true} : vector<1x8x1xf32> -> vector<1x8x1xf32>
    %82 = vector.broadcast %81 : vector<1x8x1xf32> to vector<1x8x8xf32>
    %83 = arith.mulf %78, %82 : vector<1x8x8xf32>
    %84 = arith.truncf %83 : vector<1x8x8xf32> to vector<1x8x8xbf16>
    %85 = vector.extract_strided_slice %53 {offsets = [0, 0, 8], sizes = [1, 8, 8], strides = [1, 1, 1]} : vector<1x8x32xbf16> to vector<1x8x8xbf16>
    "tpu.trace_start"() <{level = 10 : i32, message = "bqk,bkd->bqd"}> : () -> ()
    %cst_23 = arith.constant dense<0.000000e+00> : vector<1x8x8xf32>
    %86 = tpu.matmul %84, %85, %cst_23 {dimension_numbers = #tpu.dot_dimension_numbers<[2], [1], [1], [2], [0, 0, 0, 1, 1, 2], [0], [0]>} : vector<1x8x8xbf16>, vector<1x8x8xbf16>, vector<1x8x8xf32> -> vector<1x8x8xf32>
    "tpu.trace_stop"() : () -> ()
    %87 = vector.shape_cast %86 : vector<1x8x8xf32> to vector<8x8xf32>
    %88 = vector.extract_strided_slice %41 {offsets = [0, 0, 16], sizes = [1, 8, 8], strides = [1, 1, 1]} : vector<1x8x32xbf16> to vector<1x8x8xbf16>
    %89 = vector.extract_strided_slice %47 {offsets = [0, 0, 16], sizes = [1, 8, 8], strides = [1, 1, 1]} : vector<1x8x32xbf16> to vector<1x8x8xbf16>
    "tpu.trace_start"() <{level = 10 : i32, message = "bqd,bkd->bqk"}> : () -> ()
    %cst_24 = arith.constant dense<0.000000e+00> : vector<1x8x8xf32>
    %90 = tpu.matmul %88, %89, %cst_24 {dimension_numbers = #tpu.dot_dimension_numbers<[2], [2], [1], [1], [0, 0, 0, 1, 1, 1], [0], [0]>} : vector<1x8x8xbf16>, vector<1x8x8xbf16>, vector<1x8x8xf32> -> vector<1x8x8xf32>
    "tpu.trace_stop"() : () -> ()
    %cst_25 = arith.constant dense<0xFF800000> : vector<1x8xf32>
    %91 = vector.multi_reduction <maximumf>, %90, %cst_25 [2] : vector<1x8x8xf32> to vector<1x8xf32>
    %92 = vector.shape_cast %91 : vector<1x8xf32> to vector<1x8x1xf32>
    %93 = vector.broadcast %92 : vector<1x8x1xf32> to vector<1x8x8xf32>
    %94 = arith.subf %90, %93 : vector<1x8x8xf32>
    %95 = math.exp %94 : vector<1x8x8xf32>
    %cst_26 = arith.constant dense<0.000000e+00> : vector<1x8xf32>
    %96 = vector.multi_reduction <add>, %95, %cst_26 [2] : vector<1x8x8xf32> to vector<1x8xf32>
    %97 = vector.shape_cast %96 : vector<1x8xf32> to vector<1x8x1xf32>
    %98 = tpu.reciprocal %97 {approx = true} : vector<1x8x1xf32> -> vector<1x8x1xf32>
    %99 = vector.broadcast %98 : vector<1x8x1xf32> to vector<1x8x8xf32>
    %100 = arith.mulf %95, %99 : vector<1x8x8xf32>
    %101 = arith.truncf %100 : vector<1x8x8xf32> to vector<1x8x8xbf16>
    %102 = vector.extract_strided_slice %53 {offsets = [0, 0, 16], sizes = [1, 8, 8], strides = [1, 1, 1]} : vector<1x8x32xbf16> to vector<1x8x8xbf16>
    "tpu.trace_start"() <{level = 10 : i32, message = "bqk,bkd->bqd"}> : () -> ()
    %cst_27 = arith.constant dense<0.000000e+00> : vector<1x8x8xf32>
    %103 = tpu.matmul %101, %102, %cst_27 {dimension_numbers = #tpu.dot_dimension_numbers<[2], [1], [1], [2], [0, 0, 0, 1, 1, 2], [0], [0]>} : vector<1x8x8xbf16>, vector<1x8x8xbf16>, vector<1x8x8xf32> -> vector<1x8x8xf32>
    "tpu.trace_stop"() : () -> ()
    %104 = vector.shape_cast %103 : vector<1x8x8xf32> to vector<8x8xf32>
    %105 = vector.extract_strided_slice %41 {offsets = [0, 0, 24], sizes = [1, 8, 8], strides = [1, 1, 1]} : vector<1x8x32xbf16> to vector<1x8x8xbf16>
    %106 = vector.extract_strided_slice %47 {offsets = [0, 0, 24], sizes = [1, 8, 8], strides = [1, 1, 1]} : vector<1x8x32xbf16> to vector<1x8x8xbf16>
    "tpu.trace_start"() <{level = 10 : i32, message = "bqd,bkd->bqk"}> : () -> ()
    %cst_28 = arith.constant dense<0.000000e+00> : vector<1x8x8xf32>
    %107 = tpu.matmul %105, %106, %cst_28 {dimension_numbers = #tpu.dot_dimension_numbers<[2], [2], [1], [1], [0, 0, 0, 1, 1, 1], [0], [0]>} : vector<1x8x8xbf16>, vector<1x8x8xbf16>, vector<1x8x8xf32> -> vector<1x8x8xf32>
    "tpu.trace_stop"() : () -> ()
    %cst_29 = arith.constant dense<0xFF800000> : vector<1x8xf32>
    %108 = vector.multi_reduction <maximumf>, %107, %cst_29 [2] : vector<1x8x8xf32> to vector<1x8xf32>
    %109 = vector.shape_cast %108 : vector<1x8xf32> to vector<1x8x1xf32>
    %110 = vector.broadcast %109 : vector<1x8x1xf32> to vector<1x8x8xf32>
    %111 = arith.subf %107, %110 : vector<1x8x8xf32>
    %112 = math.exp %111 : vector<1x8x8xf32>
    %cst_30 = arith.constant dense<0.000000e+00> : vector<1x8xf32>
    %113 = vector.multi_reduction <add>, %112, %cst_30 [2] : vector<1x8x8xf32> to vector<1x8xf32>
    %114 = vector.shape_cast %113 : vector<1x8xf32> to vector<1x8x1xf32>
    %115 = tpu.reciprocal %114 {approx = true} : vector<1x8x1xf32> -> vector<1x8x1xf32>
    %116 = vector.broadcast %115 : vector<1x8x1xf32> to vector<1x8x8xf32>
    %117 = arith.mulf %112, %116 : vector<1x8x8xf32>
    %118 = arith.truncf %117 : vector<1x8x8xf32> to vector<1x8x8xbf16>
    %119 = vector.extract_strided_slice %53 {offsets = [0, 0, 24], sizes = [1, 8, 8], strides = [1, 1, 1]} : vector<1x8x32xbf16> to vector<1x8x8xbf16>
    "tpu.trace_start"() <{level = 10 : i32, message = "bqk,bkd->bqd"}> : () -> ()
    %cst_31 = arith.constant dense<0.000000e+00> : vector<1x8x8xf32>
    %120 = tpu.matmul %118, %119, %cst_31 {dimension_numbers = #tpu.dot_dimension_numbers<[2], [1], [1], [2], [0, 0, 0, 1, 1, 2], [0], [0]>} : vector<1x8x8xbf16>, vector<1x8x8xbf16>, vector<1x8x8xf32> -> vector<1x8x8xf32>
    "tpu.trace_stop"() : () -> ()
    %121 = vector.shape_cast %120 : vector<1x8x8xf32> to vector<8x8xf32>
    %122 = tpu.concatenate %70, %87, %104, %121 in 1 : vector<8x8xf32>, vector<8x8xf32>, vector<8x8xf32>, vector<8x8xf32> -> vector<8x32xf32>
    %123 = arith.truncf %122 : vector<8x32xf32> to vector<8x32xbf16>
    %c0_32 = arith.constant 0 : index
    %c0_33 = arith.constant 0 : index
    %c0_34 = arith.constant 0 : index
    %124 = vector.load %arg4[%c0_32, %c0_33, %c0_34] : memref<1x32x32xbf16, #tpu.memory_space<vmem>>, vector<1x32x32xbf16>
    %125 = vector.shape_cast %124 : vector<1x32x32xbf16> to vector<32x32xbf16>
    %cst_35 = arith.constant dense<0.000000e+00> : vector<8x32xf32>
    %126 = tpu.matmul %123, %125, %cst_35 {dimension_numbers = #tpu.dot_dimension_numbers<[1], [0], [0], [1], [0, 0, 1, 1], [], []>} : vector<8x32xbf16>, vector<32x32xbf16>, vector<8x32xf32> -> vector<8x32xf32>
    %127 = vector.extract_strided_slice %4 {offsets = [5, 0], sizes = [1, 32], strides = [1, 1]} : vector<11x32xf32> to vector<1x32xf32>
    %128 = vector.broadcast %127 : vector<1x32xf32> to vector<8x32xf32>
    %129 = arith.addf %126, %128 : vector<8x32xf32>
    %130 = arith.addf %31, %129 : vector<8x32xf32>
    %131 = vector.extract_strided_slice %4 {offsets = [6, 0], sizes = [1, 32], strides = [1, 1]} : vector<11x32xf32> to vector<1x32xf32>
    %132 = vector.extract_strided_slice %4 {offsets = [7, 0], sizes = [1, 32], strides = [1, 1]} : vector<11x32xf32> to vector<1x32xf32>
    %cst_36 = arith.constant dense<0.000000e+00> : vector<8xf32>
    %133 = vector.multi_reduction <add>, %130, %cst_36 [1] : vector<8x32xf32> to vector<8xf32>
    %134 = vector.shape_cast %133 : vector<8xf32> to vector<8x1xf32>
    %cst_37 = arith.constant 3.200000e+01 : f32
    %135 = vector.broadcast %cst_37 : f32 to vector<8x1xf32>
    %136 = arith.divf %134, %135 : vector<8x1xf32>
    %137 = arith.mulf %130, %130 : vector<8x32xf32>
    %cst_38 = arith.constant dense<0.000000e+00> : vector<8xf32>
    %138 = vector.multi_reduction <add>, %137, %cst_38 [1] : vector<8x32xf32> to vector<8xf32>
    %139 = vector.shape_cast %138 : vector<8xf32> to vector<8x1xf32>
    %cst_39 = arith.constant 3.200000e+01 : f32
    %140 = vector.broadcast %cst_39 : f32 to vector<8x1xf32>
    %141 = arith.divf %139, %140 : vector<8x1xf32>
    %142 = arith.mulf %136, %136 : vector<8x1xf32>
    %143 = arith.subf %141, %142 : vector<8x1xf32>
    %144 = vector.broadcast %136 : vector<8x1xf32> to vector<8x32xf32>
    %145 = arith.subf %130, %144 : vector<8x32xf32>
    %cst_40 = arith.constant 9.99999974E-6 : f32
    %146 = vector.broadcast %cst_40 : f32 to vector<8x1xf32>
    %147 = arith.addf %143, %146 : vector<8x1xf32>
    %148 = math.rsqrt %147 : vector<8x1xf32>
    %149 = vector.broadcast %148 : vector<8x1xf32> to vector<8x32xf32>
    %150 = arith.mulf %145, %149 : vector<8x32xf32>
    %151 = vector.broadcast %131 : vector<1x32xf32> to vector<8x32xf32>
    %152 = arith.mulf %150, %151 : vector<8x32xf32>
    %153 = vector.broadcast %132 : vector<1x32xf32> to vector<8x32xf32>
    %154 = arith.addf %152, %153 : vector<8x32xf32>
    %155 = arith.truncf %154 : vector<8x32xf32> to vector<8x32xbf16>
    %c0_41 = arith.constant 0 : index
    %c0_42 = arith.constant 0 : index
    %c0_43 = arith.constant 0 : index
    %156 = vector.load %arg5[%c0_41, %c0_42, %c0_43] : memref<1x32x64xbf16, #tpu.memory_space<vmem>>, vector<1x32x64xbf16>
    %157 = vector.shape_cast %156 : vector<1x32x64xbf16> to vector<32x64xbf16>
    %cst_44 = arith.constant dense<0.000000e+00> : vector<8x64xf32>
    %158 = tpu.matmul %155, %157, %cst_44 {dimension_numbers = #tpu.dot_dimension_numbers<[1], [0], [0], [1], [0, 0, 1, 1], [], []>} : vector<8x32xbf16>, vector<32x64xbf16>, vector<8x64xf32> -> vector<8x64xf32>
    %159 = vector.broadcast %6 : vector<1x64xf32> to vector<8x64xf32>
    %160 = arith.addf %158, %159 : vector<8x64xf32>
    %cst_45 = arith.constant 0.000000e+00 : f32
    %161 = vector.broadcast %cst_45 : f32 to vector<8x64xf32>
    %162 = arith.maximumf %160, %161 : vector<8x64xf32>
    %163 = arith.truncf %162 : vector<8x64xf32> to vector<8x64xbf16>
    %c0_46 = arith.constant 0 : index
    %c0_47 = arith.constant 0 : index
    %c0_48 = arith.constant 0 : index
    %164 = vector.load %arg6[%c0_46, %c0_47, %c0_48] : memref<1x64x32xbf16, #tpu.memory_space<vmem>>, vector<1x64x32xbf16>
    %165 = vector.shape_cast %164 : vector<1x64x32xbf16> to vector<64x32xbf16>
    %cst_49 = arith.constant dense<0.000000e+00> : vector<8x32xf32>
    %166 = tpu.matmul %163, %165, %cst_49 {dimension_numbers = #tpu.dot_dimension_numbers<[1], [0], [0], [1], [0, 0, 1, 1], [], []>} : vector<8x64xbf16>, vector<64x32xbf16>, vector<8x32xf32> -> vector<8x32xf32>
    %167 = vector.extract_strided_slice %4 {offsets = [8, 0], sizes = [1, 32], strides = [1, 1]} : vector<11x32xf32> to vector<1x32xf32>
    %168 = vector.broadcast %167 : vector<1x32xf32> to vector<8x32xf32>
    %169 = arith.addf %166, %168 : vector<8x32xf32>
    %170 = arith.addf %154, %169 : vector<8x32xf32>
    %171 = vector.extract_strided_slice %4 {offsets = [9, 0], sizes = [1, 32], strides = [1, 1]} : vector<11x32xf32> to vector<1x32xf32>
    %172 = vector.extract_strided_slice %4 {offsets = [10, 0], sizes = [1, 32], strides = [1, 1]} : vector<11x32xf32> to vector<1x32xf32>
    %cst_50 = arith.constant dense<0.000000e+00> : vector<8xf32>
    %173 = vector.multi_reduction <add>, %170, %cst_50 [1] : vector<8x32xf32> to vector<8xf32>
    %174 = vector.shape_cast %173 : vector<8xf32> to vector<8x1xf32>
    %cst_51 = arith.constant 3.200000e+01 : f32
    %175 = vector.broadcast %cst_51 : f32 to vector<8x1xf32>
    %176 = arith.divf %174, %175 : vector<8x1xf32>
    %177 = arith.mulf %170, %170 : vector<8x32xf32>
    %cst_52 = arith.constant dense<0.000000e+00> : vector<8xf32>
    %178 = vector.multi_reduction <add>, %177, %cst_52 [1] : vector<8x32xf32> to vector<8xf32>
    %179 = vector.shape_cast %178 : vector<8xf32> to vector<8x1xf32>
    %cst_53 = arith.constant 3.200000e+01 : f32
    %180 = vector.broadcast %cst_53 : f32 to vector<8x1xf32>
    %181 = arith.divf %179, %180 : vector<8x1xf32>
    %182 = arith.mulf %176, %176 : vector<8x1xf32>
    %183 = arith.subf %181, %182 : vector<8x1xf32>
    %184 = vector.broadcast %176 : vector<8x1xf32> to vector<8x32xf32>
    %185 = arith.subf %170, %184 : vector<8x32xf32>
    %cst_54 = arith.constant 9.99999974E-6 : f32
    %186 = vector.broadcast %cst_54 : f32 to vector<8x1xf32>
    %187 = arith.addf %183, %186 : vector<8x1xf32>
    %188 = math.rsqrt %187 : vector<8x1xf32>
    %189 = vector.broadcast %188 : vector<8x1xf32> to vector<8x32xf32>
    %190 = arith.mulf %185, %189 : vector<8x32xf32>
    %191 = vector.broadcast %171 : vector<1x32xf32> to vector<8x32xf32>
    %192 = arith.mulf %190, %191 : vector<8x32xf32>
    %193 = vector.broadcast %172 : vector<1x32xf32> to vector<8x32xf32>
    %194 = arith.addf %192, %193 : vector<8x32xf32>
    %c0_55 = arith.constant 0 : index
    %c0_56 = arith.constant 0 : index
    %195 = vector.load %arg10[%c0_55, %c0_56] : memref<8x32xf32, #tpu.memory_space<vmem>>, vector<8x32xf32>
    tpu.vector_store %arg10[%c0_55, %c0_56], %194 {strides = array<i32>} : memref<8x32xf32, #tpu.memory_space<vmem>>, vector<8x32xf32>,
    %c3_i32 = arith.constant 3 : i32
    %196 = arith.cmpi eq, %arg1, %c3_i32 : i32
    %197 = arith.extui %196 : i1 to i32
    %c0_i32_57 = arith.constant 0 : i32
    %198 = arith.cmpi ne, %197, %c0_i32_57 : i32
    scf.if %198 {
      %199 = vector.shape_cast %194 : vector<8x32xf32> to vector<1x8x32xf32>
      %c0_58 = arith.constant 0 : index
      %c0_59 = arith.constant 0 : index
      %c0_60 = arith.constant 0 : index
      %200 = vector.load %arg9[%c0_58, %c0_59, %c0_60] : memref<1x8x32xf32, #tpu.memory_space<vmem>>, vector<1x8x32xf32>
      tpu.vector_store %arg9[%c0_58, %c0_59, %c0_60], %199 {strides = array<i32>} : memref<1x8x32xf32, #tpu.memory_space<vmem>>, vector<1x8x32xf32>,
    } else {
    }
    return
  }
  func.func @transform_0(%arg0: i32, %arg1: i32) -> (i32, i32, i32) {
    %c0_i32 = arith.constant 0 : i32
    %c0_i32_0 = arith.constant 0 : i32
    %c0_i32_1 = arith.constant 0 : i32
    return %arg0, %c0_i32, %c0_i32_0 : i32, i32, i32
  }
  func.func @transform_1(%arg0: i32, %arg1: i32) -> (i32, i32, i32) {
    %c0_i32 = arith.constant 0 : i32
    %c0_i32_0 = arith.constant 0 : i32
    %c0_i32_1 = arith.constant 0 : i32
    return %arg1, %c0_i32, %c0_i32_0 : i32, i32, i32
  }
  func.func @transform_2(%arg0: i32, %arg1: i32) -> (i32, i32, i32) {
    %c0_i32 = arith.constant 0 : i32
    %c0_i32_0 = arith.constant 0 : i32
    %c0_i32_1 = arith.constant 0 : i32
    return %arg1, %c0_i32, %c0_i32_0 : i32, i32, i32
  }
  func.func @transform_3(%arg0: i32, %arg1: i32) -> (i32, i32, i32) {
    %c0_i32 = arith.constant 0 : i32
    %c0_i32_0 = arith.constant 0 : i32
    %c0_i32_1 = arith.constant 0 : i32
    return %arg1, %c0_i32, %c0_i32_0 : i32, i32, i32
  }
  func.func @transform_4(%arg0: i32, %arg1: i32) -> (i32, i32, i32) {
    %c0_i32 = arith.constant 0 : i32
    %c0_i32_0 = arith.constant 0 : i32
    %c0_i32_1 = arith.constant 0 : i32
    return %arg1, %c0_i32, %c0_i32_0 : i32, i32, i32
  }
  func.func @transform_5(%arg0: i32, %arg1: i32) -> (i32, i32, i32) {
    %c0_i32 = arith.constant 0 : i32
    %c0_i32_0 = arith.constant 0 : i32
    %c0_i32_1 = arith.constant 0 : i32
    return %arg1, %c0_i32, %c0_i32_0 : i32, i32, i32
  }
  func.func @transform_6(%arg0: i32, %arg1: i32) -> (i32, i32, i32) {
    %c0_i32 = arith.constant 0 : i32
    %c0_i32_0 = arith.constant 0 : i32
    %c0_i32_1 = arith.constant 0 : i32
    return %arg1, %c0_i32, %c0_i32_0 : i32, i32, i32
  }
  func.func @transform_7(%arg0: i32, %arg1: i32) -> (i32, i32, i32) {
    %c0_i32 = arith.constant 0 : i32
    %c0_i32_0 = arith.constant 0 : i32
    %c0_i32_1 = arith.constant 0 : i32
    return %arg0, %c0_i32, %c0_i32_0 : i32, i32, i32
  }
}

</mosaic_0001>

<bundles_post_ra>
// kernel: tpu_custom_call.1
= control target key start
LH: loop header
LB: loop body
LE: loop exit
PB: predicated region body
PF: predicated region fallthrough
CT: control target
= control target key end

     0   :  { %s2156_s0 = inlined_call_operand.vmem [shape: f32[2,8,32], index: 0, kind: input, shape index: {}]   ;;  %s2157_s1 = inlined_call_operand.vmem [shape: bf16[4,32,96], index: 1, kind: input, shape index: {}]   ;;  %s2158_s2 = inlined_call_operand.vmem [shape: bf16[4,32,32], index: 2, kind: input, shape index: {}]   ;;  %s2159_s3 = inlined_call_operand.vmem [shape: bf16[4,32,64], index: 3, kind: input, shape index: {}]   ;;  %s2160_s4 = inlined_call_operand.vmem [shape: bf16[4,64,32], index: 4, kind: input, shape index: {}]   ;;  %s2161_s5 = inlined_call_operand.vmem [shape: f32[4,11,32], index: 5, kind: input, shape index: {}]   ;;  %s2162_s6 = inlined_call_operand.vmem [shape: f32[4,1,64], index: 6, kind: input, shape index: {}]   ;;  %s2163_s7 = inlined_call_operand.hbm [shape: f32[2,8,32], index: 7, kind: output, shape index: {}]  }
   0x1   :  { %2173 = sst [smem:[#allocation15_spill]] %s2156_s0 }
   0x2   :  { %12 = vsyncpa [#allocation4], 0 }
   0x3   :  { %14 = vsyncpa [#allocation4 + $0x1], 0  ;;  %s1847_s24 = smov 0   ;;  %s1849_s25 = smov 0  }
   0x4   :  { %s1851_s26 = smov 0   ;;  %s1853_s27 = smov 0  }
   0x5   :  { %s1855_s28 = smov 0   ;;  %s1857_s29 = smov 0  }
   0x6   :  { %s1859_s30 = smov 0   ;;  %s1861_s8 = smov 0  }
   0x7 LB: > { %2174 = sst [smem:[#allocation6_spill]] %s1759_s24  ;;  %s1408_s9 = sadd.s32 4294967295, %s1787_s8   ;;  %s1787_s8 = sphi %s1861_s8, %s20_s8   ;;  %s1783_s30 = sphi %s1859_s30, %s2195_s30   ;;  %s1779_s29 = sphi %s1857_s29, %s2194_s29   ;;  %s1775_s28 = sphi %s1855_s28, %s2193_s28   ;;  %s1771_s27 = sphi %s1853_s27, %s2192_s27   ;;  %s1767_s26 = sphi %s1851_s26, %s2191_s26   ;;  %s1763_s25 = sphi %s1849_s25, %s2197_s25   ;;  %s1759_s24 = sphi %s1847_s24, %s2196_s24  }
   0x8   : > { %2175 = sst [smem:[#allocation7_spill]] %s1767_s26  ;;  %s1409_s10 = sadd.s32 4294967294, %s1787_s8  }
   0x9   : > { %2176 = sst [smem:[#allocation8_spill]] %s1779_s29  ;;  %s29_s11 = sadd.s32 1, %s1779_s29 }
   0xa   : > { %2177 = sst [smem:[#allocation9_spill]] %s1783_s30  ;;  %p30_p0 = scmp.ge.s32.totalorder %s29_s11, 4 }
   0xb   : > { %2178 = sst [smem:[#allocation10_spill]] %s1787_s8  ;;  %s32_s12 = sadd.s32 1, %s1783_s30 }
   0xc   : > { %p231_p1 = scmp.ne.s32.totalorder %s1767_s26, %s1763_s25  ;;  %p232_p2 = scmp.eq.s32.totalorder %s1408_s9, 7 }
   0xd   : > { %s2199_s11 = smov (%p30_p0, %s29_s11), 0  ;;  %s2201_s12 = smov (!%p30_p0, %s32_s12), %s1783_s30 }
   0xe   : > { %2179 = sst [smem:[#allocation11_spill]] %s2199_s11  ;;  %p1896_p3 = por %p232_p2, %p231_p1 }
   0xf   : > { %p237_p4 = scmp.ne.s32.totalorder %s1763_s25, %s1759_s24  ;;  %p34_p5 = scmp.ge.s32.totalorder %s2201_s12, 2 }
  0x10   : > { %p238_p6 = scmp.eq.s32.totalorder %s1409_s10, 7  ;;  %p1412_p7 = scmp.ge.s32.totalorder %s1787_s8, 1 }
  0x11   : > { %p309_p8 = scmp.lt.s32.totalorder %s1787_s8, 9  ;;  %s2203_s12 = smov (%p34_p5, %s2201_s12), 0 }
  0x12   : > { %2181 = sst [smem:[#allocation12_spill]] %s2203_s12  ;;  %p1906_p9 = por %p238_p6, %p237_p4 }
  0x13   : > { %p310_p10 = pnand %p1412_p7, %p309_p8  ;;  %s218_s15 = ssub.s32 %s1783_s30, %s2203_s12 }
  0x14   : > { %s2182_s14 = scalar_select %p1906_p9, 1, 0 }
  0x15   : > { %s221_s16 = sadd.s32 1, %s1767_s26  ;;  %p219_p11 = scmp.eq.s32.totalorder %s218_s15, 0 }
  0x16   : > { %2183 = sst [smem:[#allocation13_spill]] %s2182_s14  ;;  %313 = sbr.rel (%p310_p10) target bundleno = 2466 (0x9a2), region = 48 }
  0x17   : > { %s1914_s17 = scalar_select %p219_p11, %s1767_s26, %s221_s16  }
  0x18   : > { %s2165_s18 = sand.u32 (!%p310_p10), 1, %s1763_s25   ;;  %p368_p12 = scmp.lt.s32.totalorder (!%p310_p10), %s1775_s28, 1 }
  0x19   : > { %2184 = sst [smem:[#allocation14_spill]] %s1914_s17  ;;  %s1920_s19 = sshll.u32 (!%p310_p10), %s2165_s18, 3 }
  0x1a   : > { %p372_p13 = scmp.lt.s32.totalorder (!%p310_p10), %s1771_s27, 3  ;;  %s2185_s0 = sld [smem:[#allocation15_spill]] (!%p310_p10) }
  0x1b   : > { %p1425_p0 = scmp.ne.s32.totalorder (!%p310_p10), %s1771_s27, 0 }
  0x1d   : > { %s369_s20 = scalar_select %p368_p12, %s1775_s28, 1 }
  0x1e   : > { %s1925_s21 = scalar_select %p372_p13, %s1771_s27, 3 }
  0x1f   : > { %s1414_s22 = sshll.u32 %s369_s20, 3  ;;  %404 = sbr.rel (%p1425_p0) target bundleno = 38 (0x26), region = 52  ;;  %vm406_vm0 = vcmask (!%p1425_p0), 261120  }
  0x20   : > { %s371_s10 = scalar_lea.vmem %s2185_s0, %s1414_s22  ;;  %s1454_s15 = sshll.u32 %s1925_s21, 4 }
  0x21   : > { %s376_s11 = scalar_lea.vmem %s2157_s1, %s1454_s15  ;;  %s1937_s29 = scalar_lea.vmem %s2158_s2, %s1454_s15  ;;  %v405_v0 = vld [vmem:[%s371_s10] sm:$0xff] (!%p1425_p0) }
  0x22   : > { %s1942_s14 = scalar_lea.vmem %s2159_s3, %s1454_s15  ;;  %s1457_s20 = sshll.u32 %s1925_s21, 5  ;;  %407 = vst.msk [vmem:[#allocation2] sm:$0xff] (!%p1425_p0), %vm406_vm0, %v405_v0 }
  0x23   : > { %s1948_s22 = scalar_lea.vmem %s2160_s4, %s1457_s20  ;;  %s1953_s12 = scalar_lea.vmem %s2161_s5, %s1454_s15 }
  0x24   : > { %s399_s18 = scalar_lea.vmem %s2162_s6, %s1925_s21  ;;  %s367_s0 = scalar_lea.vmem [#allocation3], %s1920_s19 }
  0x26 PF: > { %vm412_vm1 = vcmask 261120   ;;  %v1661_v5 = vld [vmem:[%s376_s11] sm:$0xff]   ;;  %v1789_v6 = vmov 0.0   ;;  %vm1790_vm2 = vmmov 0   ;;  %v1662_v7 = vld [vmem:[%s376_s11 + $0x8] sm:$0xff]   ;;  %v429_v8 = vlaneseq  ;;  %s1791_s24 = smov 32  }
  0x27   : > { %1489 = vmatprep.subr.bf16.mxu0 %v1789_v6  ;;  %1493 = vmatprep.mubr.msk.bf16.mxu0 %vm1790_vm2, %v1789_v6  ;;  %v1975_v11 = vld [vmem:[%s1953_s12] sm:$0xff]  ;;  %s1792_s26 = smov 88   ;;  %s1793_s8 = smov 96   ;;  %vm528_vm3 = vcmask 64512   ;;  %vm593_vm4 = vcmask 1043456   ;;  %vm981_vm5 = vcmask 130048  }
  0x28   : > { %1490 = vmatpush3.bf16.msra.mxu0 %v1661_v5  ;;  %1497 = vmatprep.subr.bf16.mxu1 %v1789_v6  ;;  %v1971_v9 = vshrl.u32 %v429_v8, 7  ;;  %s1794_s11 = smov 120   ;;  %s1795_s17 = smov 80   ;;  %vm983_vm6 = vcmask 195584   ;;  %vm1179_vm7 = vcmask 523264  }
  0x29   : > { %v411_v1 = vld [vmem:[#allocation2] sm:$0xff]  ;;  %1491 = vmatprep.subr.bf16.mxu0 %v1789_v6  ;;  %1499 = vmatprep.mubr.msk.bf16.mxu1 %vm1790_vm2, %v1789_v6  ;;  %s1796_s10 = smov 112   ;;  %s1797_s15 = smov 72  }
  0x2a   : > { %v413_v2 = vsel %vm412_vm1, %v411_v1, 0.0  ;;  %v418_v3 = vmul.f32 %v411_v1, %v411_v1  ;;  %v507_v10 = vsub.s32 3, %v1971_v9  ;;  %v431_v20 = vsub.s32 0, %v1971_v9  ;;  %s1798_s20 = smov 104   ;;  %s1799_s23 = smov 64  }
  0x2b   : > { %414 = vadd.xlane.f32.xlu0 %v413_v2  ;;  %v436_v21 = vsub.s32 1, %v1971_v9  ;;  %v501_v30 = vsub.s32 2, %v1971_v9  ;;  %s1800_s9 = smov 56   ;;  %s1801_s16 = smov 48  }
  0x2c   : > { %v419_v4 = vsel %vm412_vm1, %v418_v3, 0.0  ;;  %1492 = vmatpush3.bf16.msra.mxu0 %v1662_v7  ;;  %v508_v12 = vrot.slane %v1975_v11, %v507_v10  ;;  %v432_v23 = vrot.slane %v1975_v11, %v431_v20  ;;  %v517_v10 = vsub.s32 4, %v1971_v9  ;;  %s1802_s30 = smov 40   ;;  %p1449_p1 = scmp.ne.s32.totalorder %s1771_s27, 3 }
  0x2d   : > { %1503 = vmatprep.subr.bf16.mxu0 %v1789_v6  ;;  %v437_v26 = vrot.slane %v1975_v11, %v436_v21  ;;  %v502_v32 = vrot.slane %v1975_v11, %v501_v30 }
  0x2e   : > { %510 = vrot.lane.b32.xlu1 %v508_v12, %s1791_s24  ;;  %v518_v12 = vrot.slane %v1975_v11, %v517_v10  ;;  %s1803_s24 = smov 8  }
  0x2f   : > { %420 = vadd.xlane.f32.xlu0 %v419_v4 }
  0xa0   : > { %v511_v31 = vpop.permute.xlu1 %510 }
  0xb8   : > { %v415_v13 = vpop.xlane.xlu0 %414 }
  0xb9   : > { %v417_v14 = vmul.f32 0.03125, %v415_v13 }
  0xbb   : > { %v423_v16 = vmul.f32 %v417_v14, %v417_v14  ;;  %v425_v22 = vsub.f32 %v411_v1, %v417_v14 }
  0xbc   : > { %v421_v15 = vpop.xlane.xlu0 %420 }
  0xbd   : > { %v422_v17 = vmul.f32 0.03125, %v421_v15 }
  0xbf   : > { %v424_v18 = vsub.f32 %v422_v17, %v423_v16 }
  0xc1   : > { %v426_v19 = vadd.f32 1e-05, %v424_v18 }
  0xc3   : > { %1671 = vrsqrt.f32 %v426_v19 }
  0xcd   : > { %v1672_v24 = vpop.eup %1671 }
  0xce   : > { %v428_v25 = vmul.f32 %v1672_v24, %v425_v22 }
  0xd0   : > { %v433_v27 = vmul.f32 %v432_v23, %v428_v25 }
  0xd2   : > { %v1986_v28 = vadd.f32 %v437_v26, %v433_v27 }
  0xd4   : > { %v439_v29 = vpack.c.bf16 %v1986_v28, %v1986_v28 }
  0xd6   : > { %1494 = vmatmul.mubr.msk.bf16.vlgmr.msra.gmra.mrb[0].mxu0 %vm412_vm1, %v439_v29 }
  0xd7   : > { %1505 = vmatprep.mubr.msk.bf16.mxu0 %vm1790_vm2, %v1789_v6 }
 0x1a9   : > { %v1997_v33 = vpop.f32.mrb[0].mxu0 }
 0x1aa   : > { %v513_v34 = vadd.f32 %v511_v31, %v1997_v33  ;;  %v1495_v35 = vpop.f32.mrb[1].mxu0  ;;  %v503_v37 = vadd.f32 %v502_v32, %v1997_v33 }
 0x1ab   : > { %v496_v36 = vpop.f32.mrb[2].mxu0 }
 0x1ac   : > { %v514_v38 = vpack.c.bf16 %v513_v34, %v513_v34  ;;  %v1496_v39 = vpop.f32.mrb[3].mxu0  ;;  %v504_v40 = vpack.c.bf16 %v503_v37, %v503_v37 }
 0x1ae   : > { %640 = vrot.lane.b32.xlu0 %v514_v38, %s1792_s26  ;;  %526 = vrot.lane.b32.xlu1 %v514_v38, %s1793_s8  ;;  %s1804_s26 = smov 16   ;;  %s1805_s8 = smov 24  }
 0x1b2   : > { %638 = vrot.lane.b32.xlu1 %v504_v40, %s1794_s11 }
 0x1b6   : > { %750 = vrot.lane.b32.xlu1 %v514_v38, %s1795_s17 }
 0x1ba   : > { %748 = vrot.lane.b32.xlu1 %v504_v40, %s1796_s10 }
 0x1be   : > { %860 = vrot.lane.b32.xlu1 %v514_v38, %s1797_s15 }
 0x1c2   : > { %858 = vrot.lane.b32.xlu1 %v504_v40, %s1798_s20 }
 0x220   : > { %v527_v41 = vpop.permute.xlu1 %526  ;;  %v641_v44 = vpop.permute.xlu0 %640 }
 0x221   : > { %v533_v42 = vsel %vm528_vm3, %v527_v41, 0  ;;  %v646_v45 = vsel %vm528_vm3, %v641_v44, 0 }
 0x222   : > { %1498 = vmatpush3.bf16.xpose.msra.mxu1 %v533_v42 }
 0x223   : > { %1509 = vmatprep.subr.bf16.mxu1 %v1789_v6 }
 0x224   : > { %v639_v43 = vpop.permute.xlu1 %638 }
 0x228   : > { %v751_v46 = vpop.permute.xlu1 %750 }
 0x229   : > { %1500 = vmatmul.mubr.msk.bf16.vlgmr.msra.gmra.mrb[0].mxu1 %vm528_vm3, %v504_v40  ;;  %v756_v48 = vsel %vm528_vm3, %v751_v46, 0 }
 0x22a   : > { %1510 = vmatpush3.bf16.xpose.msra.mxu1 %v646_v45  ;;  %1511 = vmatprep.mubr.msk.bf16.mxu1 %vm1790_vm2, %v1789_v6 }
 0x22b   : > { %1521 = vmatprep.subr.bf16.mxu1 %v1789_v6 }
 0x22c   : > { %v749_v47 = vpop.permute.xlu1 %748 }
 0x230   : > { %v861_v49 = vpop.permute.xlu1 %860 }
 0x231   : > { %1512 = vmatmul.mubr.msk.bf16.vlgmr.msra.gmra.mrb[4].mxu1 %vm528_vm3, %v639_v43  ;;  %v866_v50 = vsel %vm528_vm3, %v861_v49, 0 }
 0x232   : > { %1522 = vmatpush3.bf16.xpose.msra.mxu1 %v756_v48  ;;  %1523 = vmatprep.mubr.msk.bf16.mxu1 %vm1790_vm2, %v1789_v6 }
 0x233   : > { %1533 = vmatprep.subr.bf16.mxu1 %v1789_v6 }
 0x234   : > { %v859_v51 = vpop.permute.xlu1 %858 }
 0x239   : > { %1524 = vmatmul.mubr.msk.bf16.vlgmr.msra.gmra.mrb[8].mxu1 %vm528_vm3, %v749_v47 }
 0x23a   : > { %1534 = vmatpush3.bf16.xpose.msra.mxu1 %v866_v50  ;;  %1535 = vmatprep.mubr.msk.bf16.mxu1 %vm1790_vm2, %v1789_v6 }
 0x23b   : > { %1545 = vmatprep.subr.bf16.mxu1 %v1789_v6 }
 0x241   : > { %1536 = vmatmul.mubr.msk.bf16.vlgmr.msra.gmra.mrb[12].mxu1 %vm528_vm3, %v859_v51 }
 0x242   : > { %1549 = vmatprep.mubr.msk.bf16.mxu1 %vm1790_vm2, %v1789_v6 }
 0x2fc   : > { %v569_v52 = vpop.f32.mrb[0].mxu1 }
 0x2fd   : > { %v1501_v53 = vpop.f32.mrb[1].mxu1  ;;  %v575_v54 = vsel %vm528_vm3, %v569_v52, -inf }
 0x2fe   : > { %576 = vmax.xlane.f32.xlu1 %v575_v54  ;;  %v572_v55 = vpop.f32.mrb[2].mxu1 }
 0x2ff   : > { %v1502_v56 = vpop.f32.mrb[3].mxu1 }
 0x304   : > { %v682_v57 = vpop.f32.mrb[4].mxu1 }
 0x305   : > { %v1513_v58 = vpop.f32.mrb[5].mxu1  ;;  %v688_v59 = vsel %vm528_vm3, %v682_v57, -inf }
 0x306   : > { %689 = vmax.xlane.f32.xlu0 %v688_v59  ;;  %v685_v60 = vpop.f32.mrb[6].mxu1 }
 0x307   : > { %v1514_v61 = vpop.f32.mrb[7].mxu1 }
 0x30c   : > { %v792_v62 = vpop.f32.mrb[8].mxu1 }
 0x30d   : > { %v1525_v63 = vpop.f32.mrb[9].mxu1  ;;  %v798_v0 = vsel %vm528_vm3, %v792_v62, -inf }
 0x30e   : > { %799 = vmax.xlane.f32.xlu0 %v798_v0  ;;  %v795_v1 = vpop.f32.mrb[10].mxu1 }
 0x30f   : > { %v1526_v2 = vpop.f32.mrb[11].mxu1 }
 0x314   : > { %v902_v3 = vpop.f32.mrb[12].mxu1 }
 0x315   : > { %v1537_v4 = vpop.f32.mrb[13].mxu1  ;;  %v908_v5 = vsel %vm528_vm3, %v902_v3, -inf }
 0x316   : > { %909 = vmax.xlane.f32.xlu1 %v908_v5  ;;  %v905_v7 = vpop.f32.mrb[14].mxu1  ;;  %v1663_v4 = vld [vmem:[%s1937_s29] sm:$0xff]  }
 0x317   : > { %v1538_v8 = vpop.f32.mrb[15].mxu1  ;;  %1546 = vmatpush3.bf16.msra.mxu1 %v1663_v4 }
 0x318   : > { %1547 = vmatprep.subr.bf16.mxu1 %v1789_v6 }
 0x324   : > { %520 = vrot.lane.b32.xlu0 %v518_v12, %s1799_s23  ;;  %v1664_v12 = vld [vmem:[%s1937_s29 + $0x8] sm:$0xff]  }
 0x325   : > { %1548 = vmatpush3.bf16.msra.mxu1 %v1664_v12 }
 0x326   : > { %1561 = vmatprep.subr.bf16.mxu1 %v1789_v6 }
 0x38b   : > { %v577_v13 = vpop.xlane.xlu1 %576 }
 0x38c   : > { %v578_v14 = vsub.f32 %v569_v52, %v577_v13 }
 0x38e   : > { %v579_v15 = vmul.f32 1.442695, %v578_v14 }
 0x390   : > { %1673 = vpow2.f32 %v579_v15 }
 0x393   : > { %v690_v16 = vpop.xlane.xlu0 %689 }
 0x394   : > { %v691_v17 = vsub.f32 %v682_v57, %v690_v16 }
 0x396   : > { %v692_v18 = vmul.f32 1.442695, %v691_v17 }
 0x398   : > { %1675 = vpow2.f32 %v692_v18 }
 0x39a   : > { %v1674_v19 = vpop.eup %1673 }
 0x39b   : > { %v800_v22 = vpop.xlane.xlu0 %799  ;;  %v581_v23 = vsel %vm528_vm3, %v1674_v19, 0.0 }
 0x39c   : > { %v801_v24 = vsub.f32 %v792_v62, %v800_v22  ;;  %582 = vadd.xlane.f32.xlu1 %v581_v23 }
 0x39e   : > { %v802_v25 = vmul.f32 1.442695, %v801_v24 }
 0x39f   : > { %v521_v26 = vpop.permute.xlu0 %520 }
 0x3a0   : > { %1677 = vpow2.f32 %v802_v25  ;;  %v523_v27 = vadd.f32 %v521_v26, %v1997_v33 }
 0x3a2   : > { %v1676_v29 = vpop.eup %1675  ;;  %v524_v31 = vpack.c.bf16 %v523_v27, %v523_v27 }
 0x3a3   : > { %v910_v32 = vpop.xlane.xlu1 %909  ;;  %v694_v34 = vsel %vm528_vm3, %v1676_v29, 0.0 }
 0x3a4   : > { %v911_v35 = vsub.f32 %v902_v3, %v910_v32  ;;  %700 = vrot.lane.b32.xlu0 %v524_v31, %s1800_s9  ;;  %695 = vadd.xlane.f32.xlu1 %v694_v34  ;;  %v992_v32 = vsub.s32 5, %v1971_v9 }
 0x3a6   : > { %v912_v36 = vmul.f32 1.442695, %v911_v35  ;;  %v993_v34 = vrot.slane %v1975_v11, %v992_v32 }
 0x3a8   : > { %1679 = vpow2.f32 %v912_v36  ;;  %810 = vrot.lane.b32.xlu0 %v524_v31, %s1801_s16 }
 0x3aa   : > { %v1678_v37 = vpop.eup %1677 }
 0x3ab   : > { %v804_v38 = vsel %vm528_vm3, %v1678_v37, 0.0 }
 0x3ac   : > { %920 = vrot.lane.b32.xlu0 %v524_v31, %s1802_s30  ;;  %805 = vadd.xlane.f32.xlu1 %v804_v38 }
 0x3b2   : > { %v1680_v33 = vpop.eup %1679 }
 0x3b3   : > { %v914_v39 = vsel %vm528_vm3, %v1680_v33, 0.0 }
 0x3b4   : > { %915 = vadd.xlane.f32.xlu1 %v914_v39 }
 0x3c5   : > { %588 = vrot.lane.b32.xlu1 %v524_v31, %s1799_s23 }
 0x416   : > { %v701_v48 = vpop.permute.xlu0 %700 }
 0x417   : > { %v706_v51 = vsel %vm593_vm4, %v701_v48, 0 }
 0x41a   : > { %v811_v53 = vpop.permute.xlu0 %810 }
 0x41b   : > { %v816_v56 = vsel %vm593_vm4, %v811_v53, 0  ;;  %v1067_v53 = vsub.s32 6, %v1971_v9 }
 0x41e   : > { %v921_v58 = vpop.permute.xlu0 %920 }
 0x41f   : > { %v926_v61 = vsel %vm593_vm4, %v921_v58, 0 }
 0x429   : > { %v583_v40 = vpop.xlane.xlu1 %582 }
 0x42a   : > { %1681 = vrcp.f32 %v583_v40 }
 0x431   : > { %v696_v41 = vpop.xlane.xlu1 %695 }
 0x432   : > { %1683 = vrcp.f32 %v696_v41 }
 0x434   : > { %v1682_v43 = vpop.eup %1681 }
 0x435   : > { %v585_v45 = vmul.f32 %v1682_v43, %v1674_v19  ;;  %v1665_v43 = vld [vmem:[%s1942_s14] sm:$0xff]  }
 0x437   : > { %v586_v49 = vpack.c.bf16 %v585_v45, %v585_v45  ;;  %v1667_v45 = vld [vmem:[%s1948_s22] sm:$0xff]  }
 0x439   : > { %v806_v42 = vpop.xlane.xlu1 %805 }
 0x43a   : > { %1685 = vrcp.f32 %v806_v42 }
 0x43c   : > { %v1684_v50 = vpop.eup %1683 }
 0x43d   : > { %v698_v52 = vmul.f32 %v1684_v50, %v1676_v29 }
 0x43f   : > { %v699_v54 = vpack.c.bf16 %v698_v52, %v698_v52 }
 0x441   : > { %v916_v44 = vpop.xlane.xlu1 %915 }
 0x442   : > { %1687 = vrcp.f32 %v916_v44  ;;  %v1666_v44 = vld [vmem:[%s1942_s14 + $0x8] sm:$0xff]  }
 0x444   : > { %v1686_v55 = vpop.eup %1685 }
 0x445   : > { %v589_v46 = vpop.permute.xlu1 %588  ;;  %v808_v57 = vmul.f32 %v1686_v55, %v1678_v37 }
 0x446   : > { %v595_v47 = vsel %vm593_vm4, %v589_v46, 0  ;;  %v1668_v46 = vld [vmem:[%s1948_s22 + $0x8] sm:$0xff]  }
 0x447   : > { %1504 = vmatpush3.bf16.msra.mxu0 %v595_v47  ;;  %v809_v59 = vpack.c.bf16 %v808_v57, %v808_v57 }
 0x448   : > { %1515 = vmatprep.subr.bf16.mxu0 %v1789_v6 }
 0x44a   : > { %1506 = vmatmul.mubr.msk.bf16.vlgmr.msra.gmra.mrb[4].mxu0 %vm528_vm3, %v586_v49 }
 0x44b   : > { %1516 = vmatpush3.bf16.msra.mxu0 %v706_v51  ;;  %1517 = vmatprep.mubr.msk.bf16.mxu0 %vm1790_vm2, %v1789_v6 }
 0x44c   : > { %1527 = vmatprep.subr.bf16.mxu0 %v1789_v6  ;;  %v1688_v60 = vpop.eup %1687 }
 0x44d   : > { %v918_v62 = vmul.f32 %v1688_v60, %v1680_v33 }
 0x44f   : > { %v919_v63 = vpack.c.bf16 %v918_v62, %v918_v62 }
 0x452   : > { %1518 = vmatmul.mubr.msk.bf16.vlgmr.msra.gmra.mrb[8].mxu0 %vm528_vm3, %v699_v54  ;;  %v1072_v54 = vsub.s32 7, %v1971_v9 }
 0x453   : > { %1528 = vmatpush3.bf16.msra.mxu0 %v816_v56  ;;  %1529 = vmatprep.mubr.msk.bf16.mxu0 %vm1790_vm2, %v1789_v6  ;;  %v1068_v56 = vrot.slane %v1975_v11, %v1067_v53 }
 0x454   : > { %1539 = vmatprep.subr.bf16.mxu0 %v1789_v6 }
 0x45a   : > { %1530 = vmatmul.mubr.msk.bf16.vlgmr.msra.gmra.mrb[12].mxu0 %vm528_vm3, %v809_v59  ;;  %v1073_v59 = vrot.slane %v1975_v11, %v1072_v54 }
 0x45b   : > { %1540 = vmatpush3.bf16.msra.mxu0 %v926_v61  ;;  %1541 = vmatprep.mubr.msk.bf16.mxu0 %vm1790_vm2, %v1789_v6 }
 0x45c   : > { %1553 = vmatprep.subr.bf16.mxu0 %v1789_v6 }
 0x462   : > { %1542 = vmatmul.mubr.msk.bf16.vlgmr.msra.gmra.mrb[16].mxu0 %vm528_vm3, %v919_v63  ;;  %v1669_v63 = vld [vmem:[%s1948_s22 + $0x10] sm:$0xff]  }
 0x463   : > { %1557 = vmatprep.mubr.msk.bf16.mxu0 %vm1790_vm2, %v1789_v6  ;;  %1554 = vmatpush3.bf16.msra.mxu0 %v1665_v43 }
 0x464   : > { %1555 = vmatprep.subr.bf16.mxu0 %v1789_v6 }
 0x467   : > { %1556 = vmatpush3.bf16.msra.mxu0 %v1666_v44 }
 0x51d   : > { %v631_v0 = vpop.f32.mrb[4].mxu0 }
 0x51e   : > { %v1507_v1 = vpop.f32.mrb[5].mxu0 }
 0x51f   : > { %v634_v2 = vpop.f32.mrb[6].mxu0  ;;  %v1440_v1 = vld [vmem:[%s399_s18] ss:$0 sm:$0xff] }
 0x520   : > { %v1508_v3 = vpop.f32.mrb[7].mxu0 }
 0x525   : > { %v742_v5 = vpop.f32.mrb[8].mxu0 }
 0x526   : > { %969 = vrot.lane.b32.xlu0 %v742_v5, %s1803_s24  ;;  %v1519_v7 = vpop.f32.mrb[9].mxu0 }
 0x527   : > { %v745_v8 = vpop.f32.mrb[10].mxu0 }
 0x528   : > { %v1520_v10 = vpop.f32.mrb[11].mxu0 }
 0x529   : > { %v409_v10 = vld [vmem:[%s1953_s12 + $0x8] sm:$0x7] }
 0x52d   : > { %v852_v13 = vpop.f32.mrb[12].mxu0 }
 0x52e   : > { %973 = vrot.lane.b32.xlu1 %v852_v13, %s1804_s26  ;;  %v1531_v14 = vpop.f32.mrb[13].mxu0 }
 0x52f   : > { %v855_v15 = vpop.f32.mrb[14].mxu0 }
 0x530   : > { %v1532_v16 = vpop.f32.mrb[15].mxu0 }
 0x535   : > { %v962_v17 = vpop.f32.mrb[16].mxu0 }
 0x536   : > { %977 = vrot.lane.b32.xlu0 %v962_v17, %s1805_s8  ;;  %v1543_v18 = vpop.f32.mrb[17].mxu0 }
 0x537   : > { %v965_v19 = vpop.f32.mrb[18].mxu0 }
 0x538   : > { %v1544_v22 = vpop.f32.mrb[19].mxu0 }
 0x598   : > { %v970_v23 = vpop.permute.xlu0 %969 }
 0x599   : > { %v980_v25 = vsel %vm528_vm3, %v631_v0, %v970_v23  ;;  %v1670_v0 = vld [vmem:[%s1948_s22 + $0x18] sm:$0xff]  }
 0x5a0   : > { %v974_v24 = vpop.permute.xlu1 %973 }
 0x5a1   : > { %v982_v26 = vsel %vm981_vm5, %v980_v25, %v974_v24 }
 0x5a8   : > { %v978_v27 = vpop.permute.xlu0 %977 }
 0x5a9   : > { %v984_v29 = vsel %vm983_vm6, %v982_v26, %v978_v27 }
 0x5aa   : > { %v985_v31 = vpack.c.bf16 %v984_v29, %v984_v29 }
 0x5ac   : > { %1550 = vmatmul.mubr.msk.bf16.vlgmr.msra.gmra.mrb[16].mxu1 %vm412_vm1, %v985_v31  ;;  %v1242_v31 = vrot.slane %v409_v10, %v436_v21 }
 0x5ad   : > { %1569 = vmatprep.mubr.msk.bf16.mxu1 %vm1790_vm2, %v1789_v6  ;;  %1562 = vmatpush3.bf16.msra.mxu1 %v1667_v45 }
 0x5ae   : > { %1563 = vmatprep.subr.bf16.mxu1 %v1789_v6 }
 0x5b1   : > { %1564 = vmatpush3.bf16.msra.mxu1 %v1668_v46 }
 0x5b2   : > { %1565 = vmatprep.subr.bf16.mxu1 %v1789_v6 }
 0x5b5   : > { %1566 = vmatpush3.bf16.msra.mxu1 %v1669_v63 }
 0x5b6   : > { %1567 = vmatprep.subr.bf16.mxu1 %v1789_v6  ;;  %v1154_v6 = vrot.slane %v409_v10, %v431_v20 }
 0x5b9   : > { %1568 = vmatpush3.bf16.msra.mxu1 %v1670_v0 }
 0x67f   : > { %v1043_v35 = vpop.f32.mrb[16].mxu1 }
 0x680   : > { %v1044_v36 = vadd.f32 %v1043_v35, %v993_v34  ;;  %v1551_v37 = vpop.f32.mrb[17].mxu1  ;;  %v1247_v35 = vrot.slane %v409_v10, %v501_v30 }
 0x681   : > { %v1046_v38 = vpop.f32.mrb[18].mxu1 }
 0x682   : > { %v1049_v33 = vadd.f32 %v1044_v36, %v1986_v28  ;;  %v1552_v39 = vpop.f32.mrb[19].mxu1 }
 0x684   : > { %v1050_v40 = vsel %vm412_vm1, %v1049_v33, 0.0  ;;  %v1054_v41 = vmul.f32 %v1049_v33, %v1049_v33 }
 0x685   : > { %1051 = vadd.xlane.f32.xlu1 %v1050_v40 }
 0x686   : > { %v1055_v42 = vsel %vm412_vm1, %v1054_v41, 0.0 }
 0x687   : > { %1056 = vadd.xlane.f32.xlu0 %v1055_v42 }
 0x712   : > { %v1052_v28 = vpop.xlane.xlu1 %1051 }
 0x713   : > { %v1053_v47 = vmul.f32 0.03125, %v1052_v28 }
 0x714   : > { %v1057_v48 = vpop.xlane.xlu0 %1056 }
 0x715   : > { %v1059_v49 = vmul.f32 %v1053_v47, %v1053_v47  ;;  %v1058_v50 = vmul.f32 0.03125, %v1057_v48  ;;  %v1061_v55 = vsub.f32 %v1049_v33, %v1053_v47 }
 0x717   : > { %v1060_v51 = vsub.f32 %v1058_v50, %v1059_v49 }
 0x719   : > { %v1062_v52 = vadd.f32 1e-05, %v1060_v51 }
 0x71b   : > { %1689 = vrsqrt.f32 %v1062_v52 }
 0x725   : > { %v1690_v57 = vpop.eup %1689 }
 0x726   : > { %v1064_v58 = vmul.f32 %v1690_v57, %v1061_v55 }
 0x728   : > { %v1069_v60 = vmul.f32 %v1068_v56, %v1064_v58 }
 0x72a   : > { %v1074_v61 = vadd.f32 %v1073_v59, %v1069_v60 }
 0x72c   : > { %v1075_v62 = vpack.c.bf16 %v1074_v61, %v1074_v61 }
 0x72e   : > { %1558 = vmatmul.mubr.msk.bf16.vlgmr.msra.gmra.mrb[20].mxu0 %vm412_vm1, %v1075_v62 }
 0x801   : > { %v1135_v2 = vpop.f32.mrb[20].mxu0 }
 0x802   : > { %v1136_v3 = vadd.f32 %v1440_v1, %v1135_v2  ;;  %v1559_v11 = vpop.f32.mrb[21].mxu0 }
 0x803   : > { %v1138_v4 = vpop.f32.mrb[22].mxu0 }
 0x804   : > { %v1141_v5 = vmax.f32 %v1136_v3, 0.0  ;;  %v1560_v7 = vpop.f32.mrb[23].mxu0 }
 0x806   : > { %v1142_v8 = vpack.c.bf16 %v1141_v5, %v1141_v5 }
 0x808   : > { %1570 = vmatmul.mubr.msk.bf16.vlgmr.msra.gmra.mrb[20].mxu1 %vm1179_vm7, %v1142_v8 }
 0x8db   : > { %v1217_v12 = vpop.f32.mrb[20].mxu1 }
 0x8dc   : > { %v1218_v13 = vadd.f32 %v1217_v12, %v1154_v6  ;;  %v1571_v14 = vpop.f32.mrb[21].mxu1 }
 0x8dd   : > { %v1220_v15 = vpop.f32.mrb[22].mxu1 }
 0x8de   : > { %v1223_v16 = vadd.f32 %v1218_v13, %v1074_v61  ;;  %v1572_v17 = vpop.f32.mrb[23].mxu1 }
 0x8e0   : > { %v1224_v18 = vsel %vm412_vm1, %v1223_v16, 0.0  ;;  %v1228_v19 = vmul.f32 %v1223_v16, %v1223_v16 }
 0x8e1   : > { %1225 = vadd.xlane.f32.xlu0 %v1224_v18 }
 0x8e2   : > { %v1229_v22 = vsel %vm412_vm1, %v1228_v19, 0.0 }
 0x8e3   : > { %1230 = vadd.xlane.f32.xlu1 %v1229_v22 }
 0x96e   : > { %v1226_v23 = vpop.xlane.xlu0 %1225 }
 0x96f   : > { %v1227_v24 = vmul.f32 0.03125, %v1226_v23 }
 0x970   : > { %v1231_v25 = vpop.xlane.xlu1 %1230 }
 0x971   : > { %v1233_v26 = vmul.f32 %v1227_v24, %v1227_v24  ;;  %v1232_v27 = vmul.f32 0.03125, %v1231_v25  ;;  %v1235_v32 = vsub.f32 %v1223_v16, %v1227_v24 }
 0x973   : > { %v1234_v29 = vsub.f32 %v1232_v27, %v1233_v26 }
 0x975   : > { %v1236_v20 = vadd.f32 1e-05, %v1234_v29 }
 0x977   : > { %1691 = vrsqrt.f32 %v1236_v20 }
 0x981   : > { %v1692_v34 = vpop.eup %1691 }
 0x982   : > { %v1238_v36 = vmul.f32 %v1692_v34, %v1235_v32  ;;  %1253 = sbr.rel (%p1449_p1) target bundleno = 2441 (0x989), region = 56 }
 0x984   : > { %v1243_v37 = vmul.f32 %v1242_v31, %v1238_v36 }
 0x986   : > { %v1248_v38 = vadd.f32 %v1247_v35, %v1243_v37 }
 0x988   : > { %1249 = vst.msk [vmem:[#allocation2] sm:$0xff] %vm412_vm1, %v1248_v38  ;;  %1254 = vst.msk [vmem:[%s367_s0] sm:$0xff] (!%p1449_p1), %vm412_vm1, %v1248_v38 }
 0x989 PF: > { %s1451_s21 = sshll.u32 %s1775_s28, 7  ;;  %s1269_s11 = sshll.u32 %s367_s0, 4  ;;  %s1270_s11 = int_to_ptr.vmem [resolvable:$true] %s1269_s11 }
 0x98a   : > { %s2105_s18 = scalar_lea.hbm %s2163_s7, %s1451_s21  ;;  %s2186_s27 = sand.u32 1, %s1763_s25  }
 0x98b   : > { %s1256_s17 = scalar_lea.sflag [#allocation4], %s2186_s27  ;;  %s1693_s10 = scalar_lea.vmem %s1270_s11, 128 }
 0x98c   : > { %p1694_p2 = scmp.ne.s32.totalorder %s1270_s11, %s1693_s10  ;;  %s1806_s15 = smov [#allocation3]  }
 0x98d   : > { %s1697_s20 = sshll.u32 %s1806_s15, 4  ;;  %s1698_s20 = int_to_ptr.vmem [resolvable:$false] %s1697_s20 }
 0x98e   : > { %p1695_p4 = pnand %p1694_p2, %p1896_p3  ;;  %s1699_s23 = scalar_lea.vmem %s1698_s20, 256 }
 0x98f   : > { %p1700_p6 = scmp.lt.s32.totalorder %s1270_s11, %s1698_s20  ;;  %p1701_p7 = scmp.lt.s32.totalorder %s1699_s23, %s1693_s10 }
 0x990   : > { %p1696_p5 = pneg %p1695_p4 }
 0x991   : > { %p1702_p8 = por %p1701_p7, %p1700_p6 }
 0x993   : > { %p1703_p10 = pnand %p1702_p8, %p1696_p5 }
 0x995   : > { %1706 = shalt.err (!%p1703_p10)
}
 0x996   : > { %s1707_s0 = scalar_lea.hbm %s2105_s18, 128  ;;  %s1711_s9 = scalar_lea.hbm %s2163_s7, 256 }
 0x997   : > { %p1708_p11 = scmp.ne.s32.totalorder %s2105_s18, %s1707_s0  ;;  %p1712_p0 = scmp.lt.u32.totalorder %s2105_s18, %s2163_s7 }
 0x998   : > { %p1713_p1 = scmp.lt.u32.totalorder %s1711_s9, %s1707_s0  ;;  %p1715_p4 = scmp.lt.u32.totalorder %s1707_s0, %s2105_s18 }
 0x999   : > { %p1709_p12 = pnand %p1708_p11, %p1896_p3 }
 0x99a   : > { %p1714_p2 = por %p1713_p1, %p1712_p0 }
 0x99b   : > { %p1710_p13 = pneg %p1709_p12 }
 0x99c   : > { %p1716_p5 = por %p1715_p4, %p1714_p2 }
 0x99e   : > { %p1717_p6 = pnand %p1716_p5, %p1710_p13 }
 0x9a0   : > { %1720 = shalt.err (!%p1717_p6)
}
 0x9a1   : > { %1573 = dma.vmem_to_hbm [thread:$0]  (%p1896_p3), %s1270_s11, 128, %s2105_s18, %s1256_s17  }
 0x9a2 PF: > { %s2187_s24 = sld [smem:[#allocation10_spill]]  ;;  %s2188_s26 = sld [smem:[#allocation6_spill]] }
 0x9a8   : > { %p1579_p7 = scmp.ge.s32.totalorder %s2187_s24, 2  ;;  %s1281_s29 = sand.u32 1, %s2188_s26  }
 0x9a9   : > { %s1282_s14 = scalar_lea.sflag [#allocation4], %s1281_s29 }
 0x9aa   : > { %p1576_p8 = pnand %p1579_p7, %p1906_p9 }
 0x9ac   : > { %1754 = dma.done.wait (!%p1576_p8), %s1282_s14, 128  }
 0x9ad   : > { %1756 = vsyncadd (!%p1576_p8), %s1282_s14, 4294967168  ;;  %s20_s8 = sadd.s32 1, %s2187_s24   ;;  %s2190_s21 = sld [smem:[#allocation7_spill]] }
 0x9ae   : > { %p17_p10 = scmp.ge.s32.totalorder %s20_s8, 10   ;;  %s2191_s26 = sld [smem:[#allocation14_spill]] }
 0x9af   : > { %s2192_s27 = sld [smem:[#allocation8_spill]]  ;;  %s2193_s28 = sld [smem:[#allocation9_spill]] }
 0x9b0   : > { %s2194_s29 = sld [smem:[#allocation11_spill]]  ;;  %s2195_s30 = sld [smem:[#allocation12_spill]] }
 0x9b1   : > { %s2196_s24 = smov %s1763_s25  ;;  %19 = sbr.rel (!%p17_p10) target bundleno = 7 (0x7), region = 109 }
 0x9b3   : > { %s2197_s25 = smov %s2190_s21 }
 0x9b8   :  { %1287 = vsyncpa [#allocation4], 1 }
 0x9b9   :  { %1289 = vsyncpa [#allocation4 + $0x1], 1 }

</bundles_post_ra>
